<compile_context>
chip_gen: v5e
topology: v5e:2x2
jax: 0.10.0
libtpu: 0.0.40
codegen_flags: <defaults>
</compile_context>

<pallas_src>
import jax
import jax.numpy as jnp
from jax import lax
from jax.experimental import pallas as pl
from jax.experimental.pallas import tpu as pltpu


DEPTH = 32
HID = DEPTH * 4      # 128: padded lane width for every hidden activation
EPS = 0.8
SLOPE = 0.2


def _generator_kernel(noise_ref, c_ref, w_ref, vec_ref, out_ref):
    """Whole MLP in one grid point.

    noise_ref, c_ref : (B, 1) f32
    w_ref            : (4, 128, 128) bf16  -- zero-padded W2..W5 (stored (in,out))
    vec_ref          : (16, 128) f32       -- rows: w1[0], w1[1], b1,g1,be1,
                                              b2,g2,be2, b3,g3,be3, b4,g4,be4, b5, pad
    out_ref          : (B, vector_size) f32
    """
    batch = noise_ref.shape[0]
    inv_b = 1.0 / float(batch)

    vec = vec_ref[...]                      # (16, 128) f32

    def row(i):
        return vec[i:i + 1, :]              # (1, 128)

    w1r0, w1r1 = row(0), row(1)
    b1, g1, be1 = row(2), row(3), row(4)
    b2, g2, be2 = row(5), row(6), row(7)
    b3, g3, be3 = row(8), row(9), row(10)
    b4, g4, be4 = row(11), row(12), row(13)
    b5 = row(14)

    def bn_lrelu(y, g, be):
        # Single-pass batch stats: two independent sublane reductions.
        mean = jnp.sum(y, axis=0, keepdims=True) * inv_b
        ex2 = jnp.sum(y * y, axis=0, keepdims=True) * inv_b
        var = ex2 - mean * mean
        inv_std = lax.rsqrt(var + EPS)
        # Folded affine: only (1,128) extra math, 2 full-tensor VPU ops.
        scale = g * inv_std
        shift = be - mean * scale
        yn = y * scale + shift
        # LeakyReLU(0.2): mul + max (slope < 1).
        return jnp.maximum(yn, SLOPE * yn)

    def lin(h, wi, b):
        # bf16 MXU inputs, f32 accumulation.
        return jnp.dot(h.astype(jnp.bfloat16), w_ref[wi],
                       preferred_element_type=jnp.float32) + b

    noise = noise_ref[...]                  # (B, 1)
    c = c_ref[...]                          # (B, 1)

    # Layer 1: contraction of length 2 -> do it on the VPU, no MXU.
    y1 = noise * w1r0 + c * w1r1 + b1       # (B, 128); lanes >= 32 are exact zeros
    h = bn_lrelu(y1, g1, be1)

    h = bn_lrelu(lin(h, 0, b2), g2, be2)    # Linear(32,64)   (padded 128x128)
    h = bn_lrelu(lin(h, 1, b3), g3, be3)    # Linear(64,128)
    h = bn_lrelu(lin(h, 2, b4), g4, be4)    # Linear(128,128)

    logits = lin(h, 3, b5)                  # Linear(128,vector_size), padded cols = 0
    # Sigmoid on the EUP: exp + approximate reciprocal.
    sig = pl.reciprocal(1.0 + jnp.exp(-logits), approx=True)
    out_ref[...] = sig[:, :out_ref.shape[1]]


# ----------------------------------------------------------------------------
# Parameter construction / packing
# ----------------------------------------------------------------------------

def init_generator_params(key, vector_size):
    """PyTorch-default-like init: Linear U(+-1/sqrt(fan_in)); BN gamma=1, beta=0."""
    dims = [2, DEPTH, DEPTH * 2, DEPTH * 4, DEPTH * 4, vector_size]
    params = []
    for i in range(5):
        fan_in, fan_out = dims[i], dims[i + 1]
        key, kw, kb = jax.random.split(key, 3)
        bound = 1.0 / (fan_in ** 0.5)
        layer = {
            "w": jax.random.uniform(kw, (fan_in, fan_out), jnp.float32, -bound, bound),
            "b": jax.random.uniform(kb, (fan_out,), jnp.float32, -bound, bound),
        }
        if i < 4:
            layer["gamma"] = jnp.ones((fan_out,), jnp.float32)
            layer["beta"] = jnp.zeros((fan_out,), jnp.float32)
        params.append(layer)
    return params


def _pad_row(v):
    return jnp.pad(v, (0, HID - v.shape[0]))


def _pad_w(w):
    return jnp.pad(w, ((0, HID - w.shape[0]), (0, HID - w.shape[1])))


def pack_params(params):
    """Pack 19 params into one bf16 weight slab and one f32 vector table."""
    l1, l2, l3, l4, l5 = params
    rows = [
        _pad_row(l1["w"][0]), _pad_row(l1["w"][1]),
        _pad_row(l1["b"]), _pad_row(l1["gamma"]), _pad_row(l1["beta"]),
        _pad_row(l2["b"]), _pad_row(l2["gamma"]), _pad_row(l2["beta"]),
        _pad_row(l3["b"]), _pad_row(l3["gamma"]), _pad_row(l3["beta"]),
        _pad_row(l4["b"]), _pad_row(l4["gamma"]), _pad_row(l4["beta"]),
        _pad_row(l5["b"]),
        jnp.zeros((HID,), jnp.float32),                      # pad to 16 rows
    ]
    vec_pack = jnp.stack(rows, axis=0)                       # (16, 128) f32
    w_slab = jnp.stack([_pad_w(l["w"]) for l in (l2, l3, l4, l5)],
                       axis=0).astype(jnp.bfloat16)          # (4, 128, 128) bf16
    return w_slab, vec_pack


# ----------------------------------------------------------------------------
# Wrapper
# ----------------------------------------------------------------------------

def generator_forward(noise, c, w_slab, vec_pack, vector_size):
    assert vector_size <= HID, "vector_size must fit in one 128-lane tile"
    batch = noise.shape[0]
    noise = noise.astype(jnp.float32)
    c = c.astype(jnp.float32)

    def full_spec(shape):
        n = len(shape)
        return pl.BlockSpec(shape, lambda: (0,) * n)

    ins = [noise, c, w_slab, vec_pack]
    return pl.pallas_call(
        _generator_kernel,
        out_shape=jax.ShapeDtypeStruct((batch, vector_size), jnp.float32),
        grid_spec=pltpu.PrefetchScalarGridSpec(
            num_scalar_prefetch=0,
            grid=(),
            in_specs=[full_spec(a.shape) for a in ins],
            out_specs=full_spec((batch, vector_size)),
        ),
    )(*ins)


# ----------------------------------------------------------------------------
# Pure-JAX reference (mirrors the PyTorch module, f32 throughout)
# ----------------------------------------------------------------------------

def generator_reference(noise, c, params):
    h = jnp.concatenate([noise, c], axis=-1).astype(jnp.float32)
    for i, layer in enumerate(params):
        h = h @ layer["w"] + layer["b"]
        if i < 4:
            mean = jnp.mean(h, axis=0, keepdims=True)
            var = jnp.mean((h - mean) ** 2, axis=0, keepdims=True)
            h = (h - mean) / jnp.sqrt(var + EPS) * layer["gamma"] + layer["beta"]
            h = jnp.where(h > 0, h, SLOPE * h)
    return jax.nn.sigmoid(h)


if __name__ == "__main__":
    key = jax.random.PRNGKey(0)
    k_noise, k_c, k_params = jax.random.split(key, 3)

    batch = 8
    vector_size = 16

    noise = jax.random.normal(k_noise, (batch, 1), jnp.float32)
    c = jax.random.normal(k_c, (batch, 1), jnp.float32)

    params = init_generator_params(k_params, vector_size)
    w_slab, vec_pack = pack_params(params)

    out = generator_forward(noise, c, w_slab, vec_pack, vector_size)
    out = jax.block_until_ready(out)

    ref = generator_reference(noise, c, params)

    assert out.shape == (batch, vector_size)
    assert bool(jnp.all(jnp.isfinite(out)))
    # approx EUP reciprocal can exceed [0,1] by ~1e-3 relative; allow slack.
    assert bool(jnp.all((out >= -1e-3) & (out <= 1.0 + 1e-3)))
    max_err = float(jnp.max(jnp.abs(out - ref)))
    assert max_err < 5e-2, f"max |pallas - ref| = {max_err}"
    print("KERNEL_OK")
</pallas_src>

<mosaic_0001>
module attributes {stable_mosaic.version = 11 : i64} {
  func.func @_generator_kernel(%arg0: memref<8x1xf32, #tpu.memory_space<vmem>>, %arg1: memref<8x1xf32, #tpu.memory_space<vmem>>, %arg2: memref<4x128x128xbf16, #tpu.memory_space<vmem>>, %arg3: memref<16x128xf32, #tpu.memory_space<vmem>>, %arg4: memref<8x16xf32, #tpu.memory_space<vmem>>) attributes {dimension_semantics = [], scalar_prefetch = 0 : i64, scratch_operands = 0 : i64, tpu.core_type = #tpu.core_type<tc>} {
    %c0 = arith.constant 0 : index
    %c0_0 = arith.constant 0 : index
    %0 = vector.load %arg3[%c0, %c0_0] : memref<16x128xf32, #tpu.memory_space<vmem>>, vector<16x128xf32>
    %1 = vector.extract_strided_slice %0 {offsets = [0, 0], sizes = [1, 128], strides = [1, 1]} : vector<16x128xf32> to vector<1x128xf32>
    %2 = vector.extract_strided_slice %0 {offsets = [1, 0], sizes = [1, 128], strides = [1, 1]} : vector<16x128xf32> to vector<1x128xf32>
    %3 = vector.extract_strided_slice %0 {offsets = [2, 0], sizes = [1, 128], strides = [1, 1]} : vector<16x128xf32> to vector<1x128xf32>
    %4 = vector.extract_strided_slice %0 {offsets = [3, 0], sizes = [1, 128], strides = [1, 1]} : vector<16x128xf32> to vector<1x128xf32>
    %5 = vector.extract_strided_slice %0 {offsets = [4, 0], sizes = [1, 128], strides = [1, 1]} : vector<16x128xf32> to vector<1x128xf32>
    %6 = vector.extract_strided_slice %0 {offsets = [5, 0], sizes = [1, 128], strides = [1, 1]} : vector<16x128xf32> to vector<1x128xf32>
    %7 = vector.extract_strided_slice %0 {offsets = [6, 0], sizes = [1, 128], strides = [1, 1]} : vector<16x128xf32> to vector<1x128xf32>
    %8 = vector.extract_strided_slice %0 {offsets = [7, 0], sizes = [1, 128], strides = [1, 1]} : vector<16x128xf32> to vector<1x128xf32>
    %9 = vector.extract_strided_slice %0 {offsets = [8, 0], sizes = [1, 128], strides = [1, 1]} : vector<16x128xf32> to vector<1x128xf32>
    %10 = vector.extract_strided_slice %0 {offsets = [9, 0], sizes = [1, 128], strides = [1, 1]} : vector<16x128xf32> to vector<1x128xf32>
    %11 = vector.extract_strided_slice %0 {offsets = [10, 0], sizes = [1, 128], strides = [1, 1]} : vector<16x128xf32> to vector<1x128xf32>
    %12 = vector.extract_strided_slice %0 {offsets = [11, 0], sizes = [1, 128], strides = [1, 1]} : vector<16x128xf32> to vector<1x128xf32>
    %13 = vector.extract_strided_slice %0 {offsets = [12, 0], sizes = [1, 128], strides = [1, 1]} : vector<16x128xf32> to vector<1x128xf32>
    %14 = vector.extract_strided_slice %0 {offsets = [13, 0], sizes = [1, 128], strides = [1, 1]} : vector<16x128xf32> to vector<1x128xf32>
    %15 = vector.extract_strided_slice %0 {offsets = [14, 0], sizes = [1, 128], strides = [1, 1]} : vector<16x128xf32> to vector<1x128xf32>
    %c0_1 = arith.constant 0 : index
    %c0_2 = arith.constant 0 : index
    %16 = vector.load %arg0[%c0_1, %c0_2] : memref<8x1xf32, #tpu.memory_space<vmem>>, vector<8x1xf32>
    %c0_3 = arith.constant 0 : index
    %c0_4 = arith.constant 0 : index
    %17 = vector.load %arg1[%c0_3, %c0_4] : memref<8x1xf32, #tpu.memory_space<vmem>>, vector<8x1xf32>
    %18 = vector.broadcast %16 : vector<8x1xf32> to vector<8x128xf32>
    %19 = vector.broadcast %1 : vector<1x128xf32> to vector<8x128xf32>
    %20 = arith.mulf %18, %19 : vector<8x128xf32>
    %21 = vector.broadcast %17 : vector<8x1xf32> to vector<8x128xf32>
    %22 = vector.broadcast %2 : vector<1x128xf32> to vector<8x128xf32>
    %23 = arith.mulf %21, %22 : vector<8x128xf32>
    %24 = arith.addf %20, %23 : vector<8x128xf32>
    %25 = vector.broadcast %3 : vector<1x128xf32> to vector<8x128xf32>
    %26 = arith.addf %24, %25 : vector<8x128xf32>
    %cst = arith.constant dense<0.000000e+00> : vector<128xf32>
    %27 = vector.multi_reduction <add>, %26, %cst [0] : vector<8x128xf32> to vector<128xf32>
    %28 = vector.shape_cast %27 : vector<128xf32> to vector<1x128xf32>
    %cst_5 = arith.constant 1.250000e-01 : f32
    %29 = vector.broadcast %cst_5 : f32 to vector<1x128xf32>
    %30 = arith.mulf %28, %29 : vector<1x128xf32>
    %31 = arith.mulf %26, %26 : vector<8x128xf32>
    %cst_6 = arith.constant dense<0.000000e+00> : vector<128xf32>
    %32 = vector.multi_reduction <add>, %31, %cst_6 [0] : vector<8x128xf32> to vector<128xf32>
    %33 = vector.shape_cast %32 : vector<128xf32> to vector<1x128xf32>
    %cst_7 = arith.constant 1.250000e-01 : f32
    %34 = vector.broadcast %cst_7 : f32 to vector<1x128xf32>
    %35 = arith.mulf %33, %34 : vector<1x128xf32>
    %36 = arith.mulf %30, %30 : vector<1x128xf32>
    %37 = arith.subf %35, %36 : vector<1x128xf32>
    %cst_8 = arith.constant 8.000000e-01 : f32
    %38 = vector.broadcast %cst_8 : f32 to vector<1x128xf32>
    %39 = arith.addf %37, %38 : vector<1x128xf32>
    %40 = math.rsqrt %39 : vector<1x128xf32>
    %41 = arith.mulf %4, %40 : vector<1x128xf32>
    %42 = arith.mulf %30, %41 : vector<1x128xf32>
    %43 = arith.subf %5, %42 : vector<1x128xf32>
    %44 = vector.broadcast %41 : vector<1x128xf32> to vector<8x128xf32>
    %45 = arith.mulf %26, %44 : vector<8x128xf32>
    %46 = vector.broadcast %43 : vector<1x128xf32> to vector<8x128xf32>
    %47 = arith.addf %45, %46 : vector<8x128xf32>
    %cst_9 = arith.constant 2.000000e-01 : f32
    %48 = vector.broadcast %cst_9 : f32 to vector<8x128xf32>
    %49 = arith.mulf %48, %47 : vector<8x128xf32>
    %50 = arith.maximumf %47, %49 : vector<8x128xf32>
    %51 = arith.truncf %50 : vector<8x128xf32> to vector<8x128xbf16>
    %c0_10 = arith.constant 0 : index
    %c0_11 = arith.constant 0 : index
    %c0_12 = arith.constant 0 : index
    %52 = vector.load %arg2[%c0_10, %c0_11, %c0_12] : memref<4x128x128xbf16, #tpu.memory_space<vmem>>, vector<1x128x128xbf16>
    %53 = vector.shape_cast %52 : vector<1x128x128xbf16> to vector<128x128xbf16>
    %cst_13 = arith.constant dense<0.000000e+00> : vector<8x128xf32>
    %54 = tpu.matmul %51, %53, %cst_13 {dimension_numbers = #tpu.dot_dimension_numbers<[1], [0], [0], [1], [0, 0, 1, 1], [], []>} : vector<8x128xbf16>, vector<128x128xbf16>, vector<8x128xf32> -> vector<8x128xf32>
    %55 = vector.broadcast %6 : vector<1x128xf32> to vector<8x128xf32>
    %56 = arith.addf %54, %55 : vector<8x128xf32>
    %cst_14 = arith.constant dense<0.000000e+00> : vector<128xf32>
    %57 = vector.multi_reduction <add>, %56, %cst_14 [0] : vector<8x128xf32> to vector<128xf32>
    %58 = vector.shape_cast %57 : vector<128xf32> to vector<1x128xf32>
    %cst_15 = arith.constant 1.250000e-01 : f32
    %59 = vector.broadcast %cst_15 : f32 to vector<1x128xf32>
    %60 = arith.mulf %58, %59 : vector<1x128xf32>
    %61 = arith.mulf %56, %56 : vector<8x128xf32>
    %cst_16 = arith.constant dense<0.000000e+00> : vector<128xf32>
    %62 = vector.multi_reduction <add>, %61, %cst_16 [0] : vector<8x128xf32> to vector<128xf32>
    %63 = vector.shape_cast %62 : vector<128xf32> to vector<1x128xf32>
    %cst_17 = arith.constant 1.250000e-01 : f32
    %64 = vector.broadcast %cst_17 : f32 to vector<1x128xf32>
    %65 = arith.mulf %63, %64 : vector<1x128xf32>
    %66 = arith.mulf %60, %60 : vector<1x128xf32>
    %67 = arith.subf %65, %66 : vector<1x128xf32>
    %cst_18 = arith.constant 8.000000e-01 : f32
    %68 = vector.broadcast %cst_18 : f32 to vector<1x128xf32>
    %69 = arith.addf %67, %68 : vector<1x128xf32>
    %70 = math.rsqrt %69 : vector<1x128xf32>
    %71 = arith.mulf %7, %70 : vector<1x128xf32>
    %72 = arith.mulf %60, %71 : vector<1x128xf32>
    %73 = arith.subf %8, %72 : vector<1x128xf32>
    %74 = vector.broadcast %71 : vector<1x128xf32> to vector<8x128xf32>
    %75 = arith.mulf %56, %74 : vector<8x128xf32>
    %76 = vector.broadcast %73 : vector<1x128xf32> to vector<8x128xf32>
    %77 = arith.addf %75, %76 : vector<8x128xf32>
    %cst_19 = arith.constant 2.000000e-01 : f32
    %78 = vector.broadcast %cst_19 : f32 to vector<8x128xf32>
    %79 = arith.mulf %78, %77 : vector<8x128xf32>
    %80 = arith.maximumf %77, %79 : vector<8x128xf32>
    %81 = arith.truncf %80 : vector<8x128xf32> to vector<8x128xbf16>
    %c1 = arith.constant 1 : index
    %c0_20 = arith.constant 0 : index
    %c0_21 = arith.constant 0 : index
    %82 = vector.load %arg2[%c1, %c0_20, %c0_21] : memref<4x128x128xbf16, #tpu.memory_space<vmem>>, vector<1x128x128xbf16>
    %83 = vector.shape_cast %82 : vector<1x128x128xbf16> to vector<128x128xbf16>
    %cst_22 = arith.constant dense<0.000000e+00> : vector<8x128xf32>
    %84 = tpu.matmul %81, %83, %cst_22 {dimension_numbers = #tpu.dot_dimension_numbers<[1], [0], [0], [1], [0, 0, 1, 1], [], []>} : vector<8x128xbf16>, vector<128x128xbf16>, vector<8x128xf32> -> vector<8x128xf32>
    %85 = vector.broadcast %9 : vector<1x128xf32> to vector<8x128xf32>
    %86 = arith.addf %84, %85 : vector<8x128xf32>
    %cst_23 = arith.constant dense<0.000000e+00> : vector<128xf32>
    %87 = vector.multi_reduction <add>, %86, %cst_23 [0] : vector<8x128xf32> to vector<128xf32>
    %88 = vector.shape_cast %87 : vector<128xf32> to vector<1x128xf32>
    %cst_24 = arith.constant 1.250000e-01 : f32
    %89 = vector.broadcast %cst_24 : f32 to vector<1x128xf32>
    %90 = arith.mulf %88, %89 : vector<1x128xf32>
    %91 = arith.mulf %86, %86 : vector<8x128xf32>
    %cst_25 = arith.constant dense<0.000000e+00> : vector<128xf32>
    %92 = vector.multi_reduction <add>, %91, %cst_25 [0] : vector<8x128xf32> to vector<128xf32>
    %93 = vector.shape_cast %92 : vector<128xf32> to vector<1x128xf32>
    %cst_26 = arith.constant 1.250000e-01 : f32
    %94 = vector.broadcast %cst_26 : f32 to vector<1x128xf32>
    %95 = arith.mulf %93, %94 : vector<1x128xf32>
    %96 = arith.mulf %90, %90 : vector<1x128xf32>
    %97 = arith.subf %95, %96 : vector<1x128xf32>
    %cst_27 = arith.constant 8.000000e-01 : f32
    %98 = vector.broadcast %cst_27 : f32 to vector<1x128xf32>
    %99 = arith.addf %97, %98 : vector<1x128xf32>
    %100 = math.rsqrt %99 : vector<1x128xf32>
    %101 = arith.mulf %10, %100 : vector<1x128xf32>
    %102 = arith.mulf %90, %101 : vector<1x128xf32>
    %103 = arith.subf %11, %102 : vector<1x128xf32>
    %104 = vector.broadcast %101 : vector<1x128xf32> to vector<8x128xf32>
    %105 = arith.mulf %86, %104 : vector<8x128xf32>
    %106 = vector.broadcast %103 : vector<1x128xf32> to vector<8x128xf32>
    %107 = arith.addf %105, %106 : vector<8x128xf32>
    %cst_28 = arith.constant 2.000000e-01 : f32
    %108 = vector.broadcast %cst_28 : f32 to vector<8x128xf32>
    %109 = arith.mulf %108, %107 : vector<8x128xf32>
    %110 = arith.maximumf %107, %109 : vector<8x128xf32>
    %111 = arith.truncf %110 : vector<8x128xf32> to vector<8x128xbf16>
    %c2 = arith.constant 2 : index
    %c0_29 = arith.constant 0 : index
    %c0_30 = arith.constant 0 : index
    %112 = vector.load %arg2[%c2, %c0_29, %c0_30] : memref<4x128x128xbf16, #tpu.memory_space<vmem>>, vector<1x128x128xbf16>
    %113 = vector.shape_cast %112 : vector<1x128x128xbf16> to vector<128x128xbf16>
    %cst_31 = arith.constant dense<0.000000e+00> : vector<8x128xf32>
    %114 = tpu.matmul %111, %113, %cst_31 {dimension_numbers = #tpu.dot_dimension_numbers<[1], [0], [0], [1], [0, 0, 1, 1], [], []>} : vector<8x128xbf16>, vector<128x128xbf16>, vector<8x128xf32> -> vector<8x128xf32>
    %115 = vector.broadcast %12 : vector<1x128xf32> to vector<8x128xf32>
    %116 = arith.addf %114, %115 : vector<8x128xf32>
    %cst_32 = arith.constant dense<0.000000e+00> : vector<128xf32>
    %117 = vector.multi_reduction <add>, %116, %cst_32 [0] : vector<8x128xf32> to vector<128xf32>
    %118 = vector.shape_cast %117 : vector<128xf32> to vector<1x128xf32>
    %cst_33 = arith.constant 1.250000e-01 : f32
    %119 = vector.broadcast %cst_33 : f32 to vector<1x128xf32>
    %120 = arith.mulf %118, %119 : vector<1x128xf32>
    %121 = arith.mulf %116, %116 : vector<8x128xf32>
    %cst_34 = arith.constant dense<0.000000e+00> : vector<128xf32>
    %122 = vector.multi_reduction <add>, %121, %cst_34 [0] : vector<8x128xf32> to vector<128xf32>
    %123 = vector.shape_cast %122 : vector<128xf32> to vector<1x128xf32>
    %cst_35 = arith.constant 1.250000e-01 : f32
    %124 = vector.broadcast %cst_35 : f32 to vector<1x128xf32>
    %125 = arith.mulf %123, %124 : vector<1x128xf32>
    %126 = arith.mulf %120, %120 : vector<1x128xf32>
    %127 = arith.subf %125, %126 : vector<1x128xf32>
    %cst_36 = arith.constant 8.000000e-01 : f32
    %128 = vector.broadcast %cst_36 : f32 to vector<1x128xf32>
    %129 = arith.addf %127, %128 : vector<1x128xf32>
    %130 = math.rsqrt %129 : vector<1x128xf32>
    %131 = arith.mulf %13, %130 : vector<1x128xf32>
    %132 = arith.mulf %120, %131 : vector<1x128xf32>
    %133 = arith.subf %14, %132 : vector<1x128xf32>
    %134 = vector.broadcast %131 : vector<1x128xf32> to vector<8x128xf32>
    %135 = arith.mulf %116, %134 : vector<8x128xf32>
    %136 = vector.broadcast %133 : vector<1x128xf32> to vector<8x128xf32>
    %137 = arith.addf %135, %136 : vector<8x128xf32>
    %cst_37 = arith.constant 2.000000e-01 : f32
    %138 = vector.broadcast %cst_37 : f32 to vector<8x128xf32>
    %139 = arith.mulf %138, %137 : vector<8x128xf32>
    %140 = arith.maximumf %137, %139 : vector<8x128xf32>
    %141 = arith.truncf %140 : vector<8x128xf32> to vector<8x128xbf16>
    %c3 = arith.constant 3 : index
    %c0_38 = arith.constant 0 : index
    %c0_39 = arith.constant 0 : index
    %142 = vector.load %arg2[%c3, %c0_38, %c0_39] : memref<4x128x128xbf16, #tpu.memory_space<vmem>>, vector<1x128x128xbf16>
    %143 = vector.shape_cast %142 : vector<1x128x128xbf16> to vector<128x128xbf16>
    %cst_40 = arith.constant dense<0.000000e+00> : vector<8x128xf32>
    %144 = tpu.matmul %141, %143, %cst_40 {dimension_numbers = #tpu.dot_dimension_numbers<[1], [0], [0], [1], [0, 0, 1, 1], [], []>} : vector<8x128xbf16>, vector<128x128xbf16>, vector<8x128xf32> -> vector<8x128xf32>
    %145 = vector.broadcast %15 : vector<1x128xf32> to vector<8x128xf32>
    %146 = arith.addf %144, %145 : vector<8x128xf32>
    %cst_41 = arith.constant 0.000000e+00 : f32
    %147 = vector.broadcast %cst_41 : f32 to vector<8x128xf32>
    %148 = arith.subf %147, %146 : vector<8x128xf32>
    %149 = math.exp %148 : vector<8x128xf32>
    %cst_42 = arith.constant 1.000000e+00 : f32
    %150 = vector.broadcast %cst_42 : f32 to vector<8x128xf32>
    %151 = arith.addf %150, %149 : vector<8x128xf32>
    %152 = tpu.reciprocal %151 {approx = true} : vector<8x128xf32> -> vector<8x128xf32>
    %153 = vector.extract_strided_slice %152 {offsets = [0, 0], sizes = [8, 16], strides = [1, 1]} : vector<8x128xf32> to vector<8x16xf32>
    %c0_43 = arith.constant 0 : index
    %c0_44 = arith.constant 0 : index
    %154 = vector.load %arg4[%c0_43, %c0_44] : memref<8x16xf32, #tpu.memory_space<vmem>>, vector<8x16xf32>
    tpu.vector_store %arg4[%c0_43, %c0_44], %153 {strides = array<i32>} : memref<8x16xf32, #tpu.memory_space<vmem>>, vector<8x16xf32>,
    return
  }
}

</mosaic_0001>

<bundles_post_ra>
// kernel: tpu_custom_call.1
= control target key start
LH: loop header
LB: loop body
LE: loop exit
PB: predicated region body
PF: predicated region fallthrough
CT: control target
= control target key end

     0   :  { %9 = vsyncpa [#allocation3], 0  ;;  %s855_s0 = inlined_call_operand.vmem [shape: f32[8,1], index: 0, kind: input, shape index: {}]   ;;  %s856_s1 = inlined_call_operand.vmem [shape: f32[8,1], index: 1, kind: input, shape index: {}]   ;;  %s857_s2 = inlined_call_operand.hbm [shape: bf16[4,128,128], index: 2, kind: input, shape index: {}]   ;;  %s858_s3 = inlined_call_operand.vmem [shape: f32[16,128], index: 3, kind: input, shape index: {}]   ;;  %s859_s4 = inlined_call_operand.hbm [shape: f32[8,16], index: 4, kind: output, shape index: {}]  }
   0x1   :  { %10 = vsyncpa [#allocation4], 0  ;;  %s19_s17 = sshll.u32 %s857_s2, 4  ;;  %s788_s18 = smov [#allocation2]   ;;  %s20_s17 = int_to_ptr.hbm [resolvable:$true] %s19_s17 }
   0x2   :  { %s21_s19 = sshll.u32 %s788_s18, 4  ;;  %s789_s20 = smov 64   ;;  %s22_s19 = int_to_ptr.vmem [resolvable:$true] %s21_s19 }
   0x3   :  { %s790_s21 = smov 4  }
   0x4   :  { %27 = dma.hbm_to_vmem [thread:$0]  %s20_s17, 4096, %s22_s19, [#allocation3], %s789_s20, %s789_s20, %s790_s21  }
   0x5   :  { %784 = dma.done.wait [#allocation3], 4096  }
   0x6   :  { %785 = vsyncadd [#allocation3], 4294963200  ;;  %v791_v0 = vmov 0   ;;  %v36_v1 = vld [vmem:[%s855_s0] sm:$0xff]  ;;  %v693_v3 = vld [vmem:[#allocation2 + $0x38] sm:$0xff]  ;;  %s548_s30 = sshll.u32 %s859_s4, 4  ;;  %s549_s30 = int_to_ptr.hbm [resolvable:$true] %s548_s30 }
   0x7   :  { %723 = vset.pattern.permute.xlu0 %v791_v0  ;;  %v37_v2 = vld [vmem:[%s856_s1] sm:$0xff]  ;;  %161 = vmatpush.bf16.msra.mxu0 %v693_v3  ;;  %v692_v4 = vld [vmem:[#allocation2 + $0x30] sm:$0xff]  ;;  %v691_v5 = vld [vmem:[#allocation2 + $0x28] sm:$0xff]  ;;  %vm539_vm12 = vcmask 130048  }
   0x8   :  { %40 = vperm.xlu0 %723, %v36_v1   ;;  %v830_v7 = vld [vmem:[%s858_s3] sm:$0xff]  ;;  %v689_v11 = vld [vmem:[#allocation2 + $0x18] sm:$0xff]  ;;  %v688_v17 = vld [vmem:[#allocation2 + $0x10] sm:$0xff] }
   0x9   :  { %v690_v8 = vld [vmem:[#allocation2 + $0x20] sm:$0xff]  ;;  %v43_v9 = vperm.slane %v830_v7, 0  ;;  %v50_v10 = vperm.slane %v830_v7, 1  ;;  %v53_v15 = vperm.slane %v830_v7, 2  ;;  %v687_v21 = vld [vmem:[#allocation2 + $0x8] sm:$0xff]  ;;  %v701_v57 = vld [vmem:[#allocation2 + $0x78] sm:$0xff] }
   0xa   :  { %v686_v26 = vld [vmem:[#allocation2] sm:$0xff]  ;;  %281 = vmatpush.bf16.msra.mxu1 %v701_v57  ;;  %v700_v58 = vld [vmem:[#allocation2 + $0x70] sm:$0xff]  ;;  %v699_v59 = vld [vmem:[#allocation2 + $0x68] sm:$0xff]  ;;  %v112_v61 = vperm.slane %v830_v7, 5 }
   0xb   :  { %162 = vmatpush.bf16.msra.mxu0 %v692_v4  ;;  %v698_v60 = vld [vmem:[#allocation2 + $0x60] sm:$0xff]  ;;  %v697_v62 = vld [vmem:[#allocation2 + $0x58] sm:$0xff]  ;;  %v696_v3 = vld [vmem:[#allocation2 + $0x50] sm:$0xff] }
   0xc   :  { %v703_v57 = vld [vmem:[#allocation2 + $0x88] sm:$0xff] }
   0xe   :  { %282 = vmatpush.bf16.msra.mxu1 %v700_v58 }
   0xf   :  { %163 = vmatpush.bf16.msra.mxu0 %v691_v5 }
  0x10   :  { %47 = vperm.xlu0 %723, %v37_v2  }
  0x12   :  { %283 = vmatpush.bf16.msra.mxu1 %v699_v59 }
  0x13   :  { %164 = vmatpush.bf16.msra.mxu0 %v690_v8 }
  0x16   :  { %284 = vmatpush.bf16.msra.mxu1 %v698_v60 }
  0x17   :  { %165 = vmatpush.bf16.msra.mxu0 %v689_v11 }
  0x1a   :  { %285 = vmatpush.bf16.msra.mxu1 %v697_v62 }
  0x1b   :  { %166 = vmatpush.bf16.msra.mxu0 %v688_v17 }
  0x1e   :  { %286 = vmatpush.bf16.msra.mxu1 %v696_v3 }
  0x1f   :  { %167 = vmatpush.bf16.msra.mxu0 %v687_v21 }
  0x23   :  { %168 = vmatpush.bf16.msra.mxu0 %v686_v26 }
  0x7a   :  { %v41_v6 = vpop.permute.xlu0 %40 }
  0x7b   :  { %v44_v13 = vmul.f32 %v43_v9, %v41_v6  ;;  %v695_v9 = vld [vmem:[#allocation2 + $0x48] sm:$0xff] }
  0x7c   :  { %287 = vmatpush.bf16.msra.mxu1 %v695_v9 }
  0x82   :  { %v48_v12 = vpop.permute.xlu0 %47 }
  0x83   :  { %v51_v14 = vmul.f32 %v50_v10, %v48_v12 }
  0x85   :  { %v52_v16 = vadd.f32 %v51_v14, %v44_v13 }
  0x87   :  { %v54_v18 = vadd.f32 %v53_v15, %v52_v16  ;;  %v694_v15 = vld [vmem:[#allocation2 + $0x40] sm:$0xff] }
  0x88   :  { %288 = vmatpush.bf16.msra.mxu1 %v694_v15 }
  0x89   :  { %v55_v19 = vrot.slane %v54_v18, 4  ;;  %v62_v20 = vmul.f32 %v54_v18, %v54_v18 }
  0x8b   :  { %v56_v22 = vadd.f32 %v55_v19, %v54_v18  ;;  %v63_v23 = vrot.slane %v62_v20, 4 }
  0x8d   :  { %v57_v24 = vrot.slane %v56_v22, 2  ;;  %v64_v25 = vadd.f32 %v63_v23, %v62_v20 }
  0x8f   :  { %v65_v27 = vrot.slane %v64_v25, 2  ;;  %v58_v28 = vadd.f32 %v57_v24, %v56_v22 }
  0x91   :  { %v66_v29 = vadd.f32 %v65_v27, %v64_v25  ;;  %v59_v30 = vrot.slane %v58_v28, 1 }
  0x93   :  { %v67_v31 = vrot.slane %v66_v29, 1  ;;  %v60_v32 = vadd.f32 %v59_v30, %v58_v28 }
  0x95   :  { %v61_v33 = vmul.f32 0.125, %v60_v32  ;;  %v68_v34 = vadd.f32 %v67_v31, %v66_v29 }
  0x97   :  { %v69_v35 = vmul.f32 0.125, %v68_v34  ;;  %v70_v36 = vmul.f32 %v61_v33, %v61_v33 }
  0x99   :  { %v71_v37 = vsub.f32 %v69_v35, %v70_v36 }
  0x9b   :  { %v72_v38 = vadd.f32 0.8, %v71_v37 }
  0x9d   :  { %724 = vrsqrt.f32 %v72_v38  ;;  %vm79_vm1 = vweird.f32 %v72_v38 }
  0xa3   :  { %v725_v39 = vpop.eup %724 }
  0xa4   :  { %v74_v40 = vmul.f32 %v725_v39, %v72_v38  ;;  %vm80_vm0 = vweird.f32 %v725_v39 }
  0xa5   :  { %vm81_vm2 = vmor %vm79_vm1, %vm80_vm0 }
  0xa6   :  { %v75_v41 = vmul.f32 %v725_v39, %v74_v40 }
  0xa8   :  { %v76_v42 = vmul.f32 0.5, %v75_v41 }
  0xaa   :  { %v77_v43 = vsub.f32 1.5, %v76_v42  ;;  %v709_v42 = vld [vmem:[#allocation2 + $0xb8] sm:$0xff] }
  0xab   :  { %401 = vmatpush.bf16.msra.mxu2 %v709_v42  ;;  %v711_v42 = vld [vmem:[#allocation2 + $0xc8] sm:$0xff] }
  0xac   :  { %v78_v44 = vmul.f32 %v725_v39, %v77_v43  ;;  %v708_v43 = vld [vmem:[#allocation2 + $0xb0] sm:$0xff] }
  0xae   :  { %v82_v45 = vsel %vm81_vm2, %v725_v39, %v78_v44  ;;  %v707_v44 = vld [vmem:[#allocation2 + $0xa8] sm:$0xff] }
  0xaf   :  { %v83_v46 = vmul.f32 %v82_v45, %v830_v7  ;;  %402 = vmatpush.bf16.msra.mxu2 %v708_v43  ;;  %v843_v45 = vld [vmem:[%s858_s3 + $0x8] sm:$0xff]  ;;  %s792_s3 = smov [#allocation5]  }
  0xb0   :  { %s546_s27 = sshll.u32 %s792_s3, 4  ;;  %s547_s27 = int_to_ptr.vmem [resolvable:$true] %s546_s27 }
  0xb1   :  { %v84_v47 = vmul.f32 %v83_v46, %v61_v33  ;;  %v89_v49 = vperm.slane %v83_v46, 3  ;;  %v706_v46 = vld [vmem:[#allocation2 + $0xa0] sm:$0xff] }
  0xb3   :  { %v86_v48 = vrot.slane %v84_v47, 7  ;;  %v90_v51 = vmul.f32 %v89_v49, %v54_v18  ;;  %403 = vmatpush.bf16.msra.mxu2 %v707_v44  ;;  %v705_v47 = vld [vmem:[#allocation2 + $0x98] sm:$0xff] }
  0xb5   :  { %v88_v50 = vsub.f32 %v830_v7, %v86_v48 }
  0xb7   :  { %v91_v52 = vperm.slane %v88_v50, 4  ;;  %404 = vmatpush.bf16.msra.mxu2 %v706_v46 }
  0xb9   :  { %v92_v53 = vadd.f32 %v91_v52, %v90_v51  ;;  %v704_v52 = vld [vmem:[#allocation2 + $0x90] sm:$0xff] }
  0xbb   :  { %v93_v54 = vmul.f32 0.2, %v92_v53  ;;  %405 = vmatpush.bf16.msra.mxu2 %v705_v47 }
  0xbd   :  { %v94_v55 = vmax.f32 %v92_v53, %v93_v54 }
  0xbf   :  { %v95_v56 = vpack.c.bf16 %v94_v55, %v94_v55  ;;  %406 = vmatpush.bf16.msra.mxu2 %v704_v52 }
  0xc1   :  { %169 = vmatmul.bf16.vlgmr.msra.gmra.mxu0 %v95_v56 }
  0xc3   :  { %407 = vmatpush.bf16.msra.mxu2 %v703_v57 }
 0x13e   :  { %v170_v63 = vpop.f32.mrf.mxu0 }
 0x13f   :  { %v171_v0 = vadd.f32 %v170_v63, %v112_v61  ;;  %v702_v63 = vld [vmem:[#allocation2 + $0x80] sm:$0xff] }
 0x140   :  { %408 = vmatpush.bf16.msra.mxu2 %v702_v63 }
 0x141   :  { %v174_v1 = vrot.slane %v171_v0, 4  ;;  %v181_v2 = vmul.f32 %v171_v0, %v171_v0 }
 0x143   :  { %v175_v4 = vadd.f32 %v174_v1, %v171_v0  ;;  %v182_v5 = vrot.slane %v181_v2, 4 }
 0x145   :  { %v176_v6 = vrot.slane %v175_v4, 2  ;;  %v183_v8 = vadd.f32 %v182_v5, %v181_v2 }
 0x146   :  { %v172_v10 = vpop.f32.mrf.mxu0 }
 0x147   :  { %v177_v11 = vadd.f32 %v176_v6, %v175_v4  ;;  %v184_v12 = vrot.slane %v183_v8, 2 }
 0x149   :  { %v178_v13 = vrot.slane %v177_v11, 1  ;;  %v185_v14 = vadd.f32 %v184_v12, %v183_v8 }
 0x14b   :  { %v186_v16 = vrot.slane %v185_v14, 1  ;;  %v179_v17 = vadd.f32 %v178_v13, %v177_v11 }
 0x14d   :  { %v187_v18 = vadd.f32 %v186_v16, %v185_v14  ;;  %v180_v19 = vmul.f32 0.125, %v179_v17 }
 0x14f   :  { %v188_v20 = vmul.f32 0.125, %v187_v18  ;;  %v189_v21 = vmul.f32 %v180_v19, %v180_v19 }
 0x151   :  { %v190_v22 = vsub.f32 %v188_v20, %v189_v21 }
 0x153   :  { %v191_v23 = vadd.f32 0.8, %v190_v22 }
 0x155   :  { %726 = vrsqrt.f32 %v191_v23  ;;  %vm198_vm4 = vweird.f32 %v191_v23 }
 0x15b   :  { %v727_v24 = vpop.eup %726 }
 0x15c   :  { %v193_v25 = vmul.f32 %v727_v24, %v191_v23  ;;  %vm199_vm3 = vweird.f32 %v727_v24 }
 0x15d   :  { %vm200_vm5 = vmor %vm198_vm4, %vm199_vm3 }
 0x15e   :  { %v194_v26 = vmul.f32 %v727_v24, %v193_v25 }
 0x160   :  { %v195_v27 = vmul.f32 0.5, %v194_v26 }
 0x162   :  { %v196_v28 = vsub.f32 1.5, %v195_v27  ;;  %v717_v27 = vld [vmem:[#allocation2 + $0xf8] sm:$0xff] }
 0x163   :  { %521 = vmatpush.bf16.msra.mxu3 %v717_v27 }
 0x164   :  { %v197_v29 = vmul.f32 %v727_v24, %v196_v28  ;;  %v716_v28 = vld [vmem:[#allocation2 + $0xf0] sm:$0xff] }
 0x166   :  { %v201_v30 = vsel %vm200_vm5, %v727_v24, %v197_v29  ;;  %v715_v29 = vld [vmem:[#allocation2 + $0xe8] sm:$0xff] }
 0x167   :  { %v202_v31 = vmul.f32 %v201_v30, %v830_v7  ;;  %522 = vmatpush.bf16.msra.mxu3 %v716_v28  ;;  %v714_v30 = vld [vmem:[#allocation2 + $0xe0] sm:$0xff] }
 0x169   :  { %v203_v32 = vmul.f32 %v202_v31, %v180_v19  ;;  %v208_v34 = vperm.slane %v202_v31, 6  ;;  %v352_v31 = vperm.slane %v843_v45, 3 }
 0x16b   :  { %v205_v33 = vrot.slane %v203_v32, 7  ;;  %v209_v36 = vmul.f32 %v208_v34, %v171_v0  ;;  %523 = vmatpush.bf16.msra.mxu3 %v715_v29  ;;  %v713_v32 = vld [vmem:[#allocation2 + $0xd8] sm:$0xff] }
 0x16d   :  { %v207_v35 = vsub.f32 %v830_v7, %v205_v33  ;;  %v232_v7 = vperm.slane %v843_v45, 0 }
 0x16f   :  { %v210_v37 = vperm.slane %v207_v35, 7  ;;  %524 = vmatpush.bf16.msra.mxu3 %v714_v30 }
 0x171   :  { %v211_v38 = vadd.f32 %v210_v37, %v209_v36  ;;  %v712_v37 = vld [vmem:[#allocation2 + $0xd0] sm:$0xff] }
 0x173   :  { %v212_v39 = vmul.f32 0.2, %v211_v38  ;;  %525 = vmatpush.bf16.msra.mxu3 %v713_v32 }
 0x175   :  { %v213_v40 = vmax.f32 %v211_v38, %v212_v39 }
 0x177   :  { %v214_v41 = vpack.c.bf16 %v213_v40, %v213_v40  ;;  %526 = vmatpush.bf16.msra.mxu3 %v712_v37 }
 0x179   :  { %289 = vmatmul.bf16.vlgmr.msra.gmra.mxu1 %v214_v41 }
 0x17b   :  { %527 = vmatpush.bf16.msra.mxu3 %v711_v42 }
 0x1f6   :  { %v290_v48 = vpop.f32.mrf.mxu1 }
 0x1f7   :  { %v291_v49 = vadd.f32 %v290_v48, %v232_v7  ;;  %v710_v48 = vld [vmem:[#allocation2 + $0xc0] sm:$0xff] }
 0x1f8   :  { %528 = vmatpush.bf16.msra.mxu3 %v710_v48 }
 0x1f9   :  { %v294_v50 = vrot.slane %v291_v49, 4  ;;  %v301_v51 = vmul.f32 %v291_v49, %v291_v49 }
 0x1fb   :  { %v295_v53 = vadd.f32 %v294_v50, %v291_v49  ;;  %v302_v54 = vrot.slane %v301_v51, 4 }
 0x1fd   :  { %v296_v55 = vrot.slane %v295_v53, 2  ;;  %v303_v56 = vadd.f32 %v302_v54, %v301_v51 }
 0x1fe   :  { %v292_v58 = vpop.f32.mrf.mxu1 }
 0x1ff   :  { %v297_v59 = vadd.f32 %v296_v55, %v295_v53  ;;  %v304_v60 = vrot.slane %v303_v56, 2 }
 0x201   :  { %v298_v61 = vrot.slane %v297_v59, 1  ;;  %v305_v62 = vadd.f32 %v304_v60, %v303_v56 }
 0x203   :  { %v306_v0 = vrot.slane %v305_v62, 1  ;;  %v299_v1 = vadd.f32 %v298_v61, %v297_v59 }
 0x205   :  { %v307_v2 = vadd.f32 %v306_v0, %v305_v62  ;;  %v300_v3 = vmul.f32 0.125, %v299_v1 }
 0x207   :  { %v308_v4 = vmul.f32 0.125, %v307_v2  ;;  %v309_v5 = vmul.f32 %v300_v3, %v300_v3 }
 0x209   :  { %v310_v6 = vsub.f32 %v308_v4, %v309_v5 }
 0x20b   :  { %v311_v8 = vadd.f32 0.8, %v310_v6 }
 0x20d   :  { %728 = vrsqrt.f32 %v311_v8  ;;  %vm318_vm7 = vweird.f32 %v311_v8 }
 0x213   :  { %v729_v9 = vpop.eup %728 }
 0x214   :  { %v313_v10 = vmul.f32 %v729_v9, %v311_v8  ;;  %vm319_vm6 = vweird.f32 %v729_v9 }
 0x215   :  { %vm320_vm8 = vmor %vm318_vm7, %vm319_vm6 }
 0x216   :  { %v314_v11 = vmul.f32 %v729_v9, %v313_v10 }
 0x218   :  { %v315_v12 = vmul.f32 0.5, %v314_v11 }
 0x21a   :  { %v316_v13 = vsub.f32 1.5, %v315_v12  ;;  %v472_v12 = vperm.slane %v843_v45, 6 }
 0x21c   :  { %v317_v14 = vmul.f32 %v729_v9, %v316_v13 }
 0x21e   :  { %v321_v15 = vsel %vm320_vm8, %v729_v9, %v317_v14 }
 0x21f   :  { %v322_v16 = vmul.f32 %v321_v15, %v843_v45 }
 0x221   :  { %v323_v17 = vmul.f32 %v322_v16, %v300_v3  ;;  %v328_v19 = vperm.slane %v322_v16, 1 }
 0x223   :  { %v325_v18 = vrot.slane %v323_v17, 7  ;;  %v329_v21 = vmul.f32 %v328_v19, %v291_v49 }
 0x225   :  { %v327_v20 = vsub.f32 %v843_v45, %v325_v18 }
 0x227   :  { %v330_v22 = vperm.slane %v327_v20, 2 }
 0x229   :  { %v331_v23 = vadd.f32 %v330_v22, %v329_v21 }
 0x22b   :  { %v332_v24 = vmul.f32 0.2, %v331_v23 }
 0x22d   :  { %v333_v25 = vmax.f32 %v331_v23, %v332_v24 }
 0x22f   :  { %v334_v26 = vpack.c.bf16 %v333_v25, %v333_v25 }
 0x231   :  { %409 = vmatmul.bf16.vlgmr.msra.gmra.mxu2 %v334_v26 }
 0x2b4   :  { %v410_v33 = vpop.f32.mrf.mxu2 }
 0x2b5   :  { %v411_v34 = vadd.f32 %v410_v33, %v352_v31 }
 0x2b7   :  { %v414_v35 = vrot.slane %v411_v34, 4  ;;  %v421_v36 = vmul.f32 %v411_v34, %v411_v34 }
 0x2b9   :  { %v415_v38 = vadd.f32 %v414_v35, %v411_v34  ;;  %v422_v39 = vrot.slane %v421_v36, 4 }
 0x2bb   :  { %v416_v40 = vrot.slane %v415_v38, 2  ;;  %v423_v41 = vadd.f32 %v422_v39, %v421_v36 }
 0x2bc   :  { %v412_v43 = vpop.f32.mrf.mxu2 }
 0x2bd   :  { %v417_v44 = vadd.f32 %v416_v40, %v415_v38  ;;  %v424_v46 = vrot.slane %v423_v41, 2 }
 0x2bf   :  { %v418_v7 = vrot.slane %v417_v44, 1  ;;  %v425_v47 = vadd.f32 %v424_v46, %v423_v41 }
 0x2c1   :  { %v426_v49 = vrot.slane %v425_v47, 1  ;;  %v419_v50 = vadd.f32 %v418_v7, %v417_v44 }
 0x2c3   :  { %v427_v51 = vadd.f32 %v426_v49, %v425_v47  ;;  %v420_v52 = vmul.f32 0.125, %v419_v50 }
 0x2c5   :  { %v428_v53 = vmul.f32 0.125, %v427_v51  ;;  %v429_v54 = vmul.f32 %v420_v52, %v420_v52 }
 0x2c7   :  { %v430_v55 = vsub.f32 %v428_v53, %v429_v54 }
 0x2c9   :  { %v431_v56 = vadd.f32 0.8, %v430_v55 }
 0x2cb   :  { %730 = vrsqrt.f32 %v431_v56  ;;  %vm438_vm10 = vweird.f32 %v431_v56 }
 0x2d1   :  { %v731_v57 = vpop.eup %730 }
 0x2d2   :  { %v433_v58 = vmul.f32 %v731_v57, %v431_v56  ;;  %vm439_vm9 = vweird.f32 %v731_v57 }
 0x2d3   :  { %vm440_vm11 = vmor %vm438_vm10, %vm439_vm9 }
 0x2d4   :  { %v434_v59 = vmul.f32 %v731_v57, %v433_v58 }
 0x2d6   :  { %v435_v60 = vmul.f32 0.5, %v434_v59 }
 0x2d8   :  { %v436_v61 = vsub.f32 1.5, %v435_v60 }
 0x2da   :  { %v437_v62 = vmul.f32 %v731_v57, %v436_v61 }
 0x2dc   :  { %v441_v63 = vsel %vm440_vm11, %v731_v57, %v437_v62 }
 0x2dd   :  { %v442_v0 = vmul.f32 %v441_v63, %v843_v45 }
 0x2df   :  { %v443_v1 = vmul.f32 %v442_v0, %v420_v52  ;;  %v448_v3 = vperm.slane %v442_v0, 4 }
 0x2e1   :  { %v445_v2 = vrot.slane %v443_v1, 7  ;;  %v449_v5 = vmul.f32 %v448_v3, %v411_v34 }
 0x2e3   :  { %v447_v4 = vsub.f32 %v843_v45, %v445_v2 }
 0x2e5   :  { %v450_v6 = vperm.slane %v447_v4, 5 }
 0x2e7   :  { %v451_v8 = vadd.f32 %v450_v6, %v449_v5 }
 0x2e9   :  { %v452_v9 = vmul.f32 0.2, %v451_v8 }
 0x2eb   :  { %v453_v10 = vmax.f32 %v451_v8, %v452_v9 }
 0x2ed   :  { %v454_v11 = vpack.c.bf16 %v453_v10, %v453_v10 }
 0x2ef   :  { %529 = vmatmul.bf16.vlgmr.msra.gmra.mxu3 %v454_v11 }
 0x372   :  { %v530_v13 = vpop.f32.mrf.mxu3 }
 0x373   :  { %v531_v14 = vadd.f32 %v530_v13, %v472_v12 }
 0x375   :  { %v534_v15 = vsub.f32 0.0, %v531_v14 }
 0x377   :  { %v535_v16 = vmul.f32 1.442695, %v534_v15 }
 0x379   :  { %732 = vpow2.f32 %v535_v16 }
 0x37a   :  { %v532_v17 = vpop.f32.mrf.mxu3 }
 0x37f   :  { %v733_v18 = vpop.eup %732 }
 0x380   :  { %v537_v19 = vadd.f32 1.0, %v733_v18 }
 0x382   :  { %734 = vrcp.f32 %v537_v19 }
 0x388   :  { %v735_v20 = vpop.eup %734 }
 0x389   :  { %540 = vst.msk [vmem:[#allocation5] sm:$0xff] %vm539_vm12, %v735_v20 }
 0x38a   :  { %551 = dma.vmem_to_hbm [thread:$0]  %s547_s27, 128, %s549_s30, [#allocation4]  }
 0x38b   :  { %786 = dma.done.wait [#allocation4], 128  }
 0x38c   :  { %787 = vsyncadd [#allocation4], 4294967168 }
 0x38d   :  { %556 = vsyncpa [#allocation3], 1 }
 0x38e   :  { %557 = vsyncpa [#allocation4], 1 }

</bundles_post_ra>
